<compile_context>
chip_gen: v5e
topology: v5e:2x2
jax: 0.10.0
libtpu: 0.0.40
codegen_flags: <defaults>
</compile_context>

<pallas_src>
import jax
import jax.numpy as jnp
from jax.experimental import pallas as pl
from jax.experimental.pallas import tpu as pltpu

ANNOTATION = 8                       # annotation_size
HIDDEN = 24                          # hidden_size
STATE = ANNOTATION + HIDDEN          # GGNN state size (out_channels) = 32
NUM_LAYERS = 2                       # GGNN propagation steps
N_NODES = 16
N_GRAPHS = 2
CAT_DIM = STATE + ANNOTATION         # feature dim fed to the attention layer = 40
LANES = 128                          # 4*STATE == 128: packed gate width / cat slab
G_PAD = 8                            # graph axis padded to the sublane tile


def _ggnn_attention_kernel(xpad_ref, adj_ref, oh_ng_ref, oh_gn_ref,
                           wp_ref, sp_ref, out_ref, slab_ref):
    f32 = jnp.float32

    def mm(a, b):
        return jnp.dot(a, b, preferred_element_type=f32)

    xpad = xpad_ref[...]        # (N, STATE)  annotations zero-padded; also h0
    adj = adj_ref[...]          # (N, N)      adj[dst, src] = edge multiplicity
    oh_ng = oh_ng_ref[...]      # (N, G_PAD)  one-hot graph membership (zero pad cols)
    oh_gn = oh_gn_ref[...]      # (G_PAD, N)
    bias = sp_ref[0:1, :]       # (1, 128)    [bir+bhr | biz+bhz | bin | bhn]
    gw_row = sp_ref[1:2, :]     # (1, 128)    gate weight, laid out like the cat slab
    gb = sp_ref[2:3, 0:1]       # (1, 1)      gate bias

    # One zero-fill; lanes 64:128 of the slab stay zero for the whole kernel.
    slab_ref[...] = jnp.zeros_like(slab_ref)

    # ---- GatedGraphConv: NUM_LAYERS x (aggregate + GRUCell), 2 matmuls/layer ----
    #   m = adj @ h @ w[l]; GRU(m, h).  w[l] is pre-fused into the packed weights,
    #   and input+hidden gate projections are one [adj@h | h] @ wp[l] matmul whose
    #   128 output lanes are [r | z | n_input | n_hidden].
    h = xpad
    for layer in range(NUM_LAYERS):
        ah = mm(adj, h)                                   # (N, STATE)
        slab_ref[:, 0:STATE] = ah
        slab_ref[:, STATE:2 * STATE] = h
        g = mm(slab_ref[:, 0:2 * STATE], wp_ref[layer]) + bias      # (N, 128)
        r = jax.nn.sigmoid(g[:, 0:STATE])
        z = jax.nn.sigmoid(g[:, STATE:2 * STATE])
        n = jnp.tanh(g[:, 2 * STATE:3 * STATE]
                     + r * g[:, 3 * STATE:4 * STATE])
        h = (1.0 - z) * n + z * h

    # ---- cat = concat(h, x): lane-dense 128-wide slab [h | x,0 | 0] ----
    slab_ref[:, 0:STATE] = h
    slab_ref[:, STATE:2 * STATE] = xpad   # first ANNOTATION cols are x, rest zero
    cat = slab_ref[...]                   # (N, 128)

    # ---- gate_nn(cat): width-1 Linear as VPU multiply + lane reduce (no MXU) ----
    gate = jnp.sum(cat * gw_row, axis=-1, keepdims=True) + gb       # (N, 1)

    # ---- GlobalAttention: per-graph softmax over nodes + weighted segment-sum ----
    masked = jnp.where(oh_ng > 0.5, gate, -1e30)                    # (N, G_PAD)
    seg_max = jnp.max(masked, axis=0, keepdims=True)                # (1, G_PAD)
    node_max = jnp.sum(oh_ng * seg_max, axis=1, keepdims=True)      # (N, 1)
    e = jnp.exp(gate - node_max)                                    # (N, 1)
    seg_sum = jnp.sum(oh_ng * e, axis=0, keepdims=True)             # (1, G_PAD)
    node_sum = jnp.sum(oh_ng * seg_sum, axis=1, keepdims=True)      # (N, 1)
    # guard against all-zero membership rows (padded nodes); no-op for real nodes
    alpha = e / jnp.maximum(node_sum, 1e-30)                        # (N, 1)
    out_ref[...] = mm(oh_gn, alpha * cat)                           # (G_PAD, 128)


def _pack_params(params):
    """Pack + fuse GRU/gate parameters into 2 lane-padded arrays (glue, runs once)."""
    zero = jnp.zeros((STATE, STATE), jnp.float32)
    wp_layers = []
    for layer in range(NUM_LAYERS):
        wl = params["w"][layer]
        # top rows multiply (adj @ h); propagation weight w[l] fused in:
        #   m @ Wi* = (adj @ h @ w[l]) @ Wi* = (adj @ h) @ (w[l] @ Wi*)
        top = jnp.concatenate([wl @ params["wir"], wl @ params["wiz"],
                               wl @ params["win"], zero], axis=1)        # (STATE, 128)
        # bottom rows multiply h (hidden-side GRU weights)
        bot = jnp.concatenate([params["whr"], params["whz"],
                               zero, params["whn"]], axis=1)             # (STATE, 128)
        wp_layers.append(jnp.concatenate([top, bot], axis=0))            # (2*STATE, 128)
    wp = jnp.stack(wp_layers, axis=0)                                    # (L, 64, 128)

    bias_row = jnp.concatenate([params["bir"] + params["bhr"],
                                params["biz"] + params["bhz"],
                                params["bin"], params["bhn"]], axis=1)   # (1, 128)
    # gate_nn weight laid out to match the cat slab: [h(0:32) | x(32:40) | 0]
    gw = params["gw"][:, 0]
    gw_row = jnp.zeros((1, LANES), jnp.float32)
    gw_row = gw_row.at[0, 0:STATE].set(gw[0:STATE])
    gw_row = gw_row.at[0, STATE:STATE + ANNOTATION].set(gw[STATE:CAT_DIM])
    gb_row = jnp.zeros((1, LANES), jnp.float32).at[0, 0].set(params["gb"][0, 0])
    sp = jnp.concatenate([bias_row, gw_row, gb_row], axis=0)             # (3, 128)
    return wp, sp


def graph_level_ggnn(x, adj, batch, params):
    """Wrapper: pack parameters / build dense encodings, run the fused kernel."""
    xpad = jnp.pad(x, ((0, 0), (0, HIDDEN)))                          # (N, STATE)
    oh_ng = (batch[:, None] == jnp.arange(G_PAD)[None, :]).astype(jnp.float32)
    oh_gn = oh_ng.T                                                   # (G_PAD, N)
    wp, sp = _pack_params(params)
    args = (xpad, adj, oh_ng, oh_gn, wp, sp)
    out = pl.pallas_call(
        _ggnn_attention_kernel,
        out_shape=jax.ShapeDtypeStruct((G_PAD, LANES), jnp.float32),
        in_specs=[pl.BlockSpec(memory_space=pltpu.MemorySpace.VMEM) for _ in args],
        out_specs=pl.BlockSpec(memory_space=pltpu.MemorySpace.VMEM),
        scratch_shapes=[pltpu.VMEM((N_NODES, LANES), jnp.float32)],
    )(*args)
    return out[:N_GRAPHS, :CAT_DIM]


def reference(x, adj, batch, params):
    """Pure-JAX reference of the same forward pass (unpacked params)."""
    oh_ng = (batch[:, None] == jnp.arange(N_GRAPHS)[None, :]).astype(jnp.float32)
    oh_gn = oh_ng.T
    h = jnp.pad(x, ((0, 0), (0, HIDDEN)))
    for layer in range(NUM_LAYERS):
        m = adj @ (h @ params["w"][layer])
        r = jax.nn.sigmoid(m @ params["wir"] + params["bir"]
                           + h @ params["whr"] + params["bhr"])
        z = jax.nn.sigmoid(m @ params["wiz"] + params["biz"]
                           + h @ params["whz"] + params["bhz"])
        n = jnp.tanh(m @ params["win"] + params["bin"]
                     + r * (h @ params["whn"] + params["bhn"]))
        h = (1.0 - z) * n + z * h
    cat = jnp.concatenate([h, x], axis=-1)
    gate = cat @ params["gw"] + params["gb"]
    masked = jnp.where(oh_ng > 0.5, gate, -1e30)
    seg_max = jnp.max(masked, axis=0, keepdims=True)
    node_max = jnp.sum(oh_ng * seg_max, axis=1, keepdims=True)
    e = jnp.exp(gate - node_max)
    seg_sum = jnp.sum(oh_ng * e, axis=0, keepdims=True)
    node_sum = jnp.sum(oh_ng * seg_sum, axis=1, keepdims=True)
    alpha = e / node_sum
    return oh_gn @ (alpha * cat)


def init_params(key):
    """Deterministic synthetic parameters (shapes match the torch modules,
    GRUCell/Linear weights stored pre-transposed for row-vector matmul)."""
    D = STATE
    ks = jax.random.split(key, 14)
    return {
        "w":   0.2 * jax.random.normal(ks[0], (NUM_LAYERS, D, D), jnp.float32),
        "wir": 0.2 * jax.random.normal(ks[1], (D, D), jnp.float32),
        "wiz": 0.2 * jax.random.normal(ks[2], (D, D), jnp.float32),
        "win": 0.2 * jax.random.normal(ks[3], (D, D), jnp.float32),
        "whr": 0.2 * jax.random.normal(ks[4], (D, D), jnp.float32),
        "whz": 0.2 * jax.random.normal(ks[5], (D, D), jnp.float32),
        "whn": 0.2 * jax.random.normal(ks[6], (D, D), jnp.float32),
        "bir": 0.1 * jax.random.normal(ks[7], (1, D), jnp.float32),
        "biz": 0.1 * jax.random.normal(ks[8], (1, D), jnp.float32),
        "bin": 0.1 * jax.random.normal(ks[9], (1, D), jnp.float32),
        "bhr": 0.1 * jax.random.normal(ks[10], (1, D), jnp.float32),
        "bhz": 0.1 * jax.random.normal(ks[11], (1, D), jnp.float32),
        "bhn": 0.1 * jax.random.normal(ks[12], (1, D), jnp.float32),
        # gate_nn = Linear(CAT_DIM, 1); final_layer = None
        "gw":  0.2 * jax.random.normal(ks[13], (CAT_DIM, 1), jnp.float32),
        "gb":  jnp.zeros((1, 1), jnp.float32),
    }


if __name__ == "__main__":
    key = jax.random.PRNGKey(0)
    kx, kp = jax.random.split(key)

    # Two ring graphs of 8 nodes each, edges in both directions.
    src0 = jnp.arange(8, dtype=jnp.int32)
    dst0 = (src0 + 1) % 8
    src = jnp.concatenate([src0, dst0, src0 + 8, dst0 + 8])
    dst = jnp.concatenate([dst0, src0, dst0 + 8, src0 + 8])
    # edge_index equivalent (2, 32) -> dense adjacency (glue)
    adj = jnp.zeros((N_NODES, N_NODES), jnp.float32).at[dst, src].add(1.0)
    batch = jnp.concatenate([jnp.zeros(8, jnp.int32), jnp.ones(8, jnp.int32)])

    x = jax.random.normal(kx, (N_NODES, ANNOTATION), jnp.float32)
    params = init_params(kp)

    out = graph_level_ggnn(x, adj, batch, params)
    out = jax.block_until_ready(out)

    ref = reference(x, adj, batch, params)
    assert out.shape == (N_GRAPHS, CAT_DIM), out.shape
    assert jnp.allclose(out, ref, atol=1e-4, rtol=1e-4), (
        "mismatch vs reference: max abs err "
        f"{float(jnp.max(jnp.abs(out - ref)))}")
    print("KERNEL_OK")
</pallas_src>

<mosaic_0001>
module attributes {stable_mosaic.version = 11 : i64} {
  func.func @_ggnn_attention_kernel(%arg0: memref<16x32xf32, #tpu.memory_space<vmem>>, %arg1: memref<16x16xf32, #tpu.memory_space<vmem>>, %arg2: memref<16x8xf32, #tpu.memory_space<vmem>>, %arg3: memref<8x16xf32, #tpu.memory_space<vmem>>, %arg4: memref<2x64x128xf32, #tpu.memory_space<vmem>>, %arg5: memref<3x128xf32, #tpu.memory_space<vmem>>, %arg6: memref<8x128xf32, #tpu.memory_space<vmem>>, %arg7: memref<16x128xf32, #tpu.memory_space<vmem>>) attributes {dimension_semantics = [], scalar_prefetch = 0 : i64, scratch_operands = 1 : i64, tpu.core_type = #tpu.core_type<tc>} {
    %c0 = arith.constant 0 : index
    %c0_0 = arith.constant 0 : index
    %0 = vector.load %arg0[%c0, %c0_0] : memref<16x32xf32, #tpu.memory_space<vmem>>, vector<16x32xf32>
    %c0_1 = arith.constant 0 : index
    %c0_2 = arith.constant 0 : index
    %1 = vector.load %arg1[%c0_1, %c0_2] : memref<16x16xf32, #tpu.memory_space<vmem>>, vector<16x16xf32>
    %c0_3 = arith.constant 0 : index
    %c0_4 = arith.constant 0 : index
    %2 = vector.load %arg2[%c0_3, %c0_4] : memref<16x8xf32, #tpu.memory_space<vmem>>, vector<16x8xf32>
    %c0_5 = arith.constant 0 : index
    %c0_6 = arith.constant 0 : index
    %3 = vector.load %arg3[%c0_5, %c0_6] : memref<8x16xf32, #tpu.memory_space<vmem>>, vector<8x16xf32>
    %c0_7 = arith.constant 0 : index
    %c0_8 = arith.constant 0 : index
    %4 = vector.load %arg5[%c0_7, %c0_8] : memref<3x128xf32, #tpu.memory_space<vmem>>, vector<1x128xf32>
    %c1 = arith.constant 1 : index
    %c0_9 = arith.constant 0 : index
    %5 = vector.load %arg5[%c1, %c0_9] : memref<3x128xf32, #tpu.memory_space<vmem>>, vector<1x128xf32>
    %c2 = arith.constant 2 : index
    %c0_10 = arith.constant 0 : index
    %6 = vector.load %arg5[%c2, %c0_10] : memref<3x128xf32, #tpu.memory_space<vmem>>, vector<1x1xf32>
    %cst = arith.constant 0.000000e+00 : f32
    %7 = vector.broadcast %cst : f32 to vector<16x128xf32>
    %c0_11 = arith.constant 0 : index
    %c0_12 = arith.constant 0 : index
    %8 = vector.load %arg7[%c0_11, %c0_12] : memref<16x128xf32, #tpu.memory_space<vmem>>, vector<16x128xf32>
    tpu.vector_store %arg7[%c0_11, %c0_12], %7 {strides = array<i32>} : memref<16x128xf32, #tpu.memory_space<vmem>>, vector<16x128xf32>,
    %cst_13 = arith.constant dense<0.000000e+00> : vector<16x32xf32>
    %9 = tpu.matmul %1, %0, %cst_13 {dimension_numbers = #tpu.dot_dimension_numbers<[1], [0], [0], [1], [0, 0, 1, 1], [], []>} : vector<16x16xf32>, vector<16x32xf32>, vector<16x32xf32> -> vector<16x32xf32>
    %c0_14 = arith.constant 0 : index
    %c0_15 = arith.constant 0 : index
    %10 = vector.load %arg7[%c0_14, %c0_15] : memref<16x128xf32, #tpu.memory_space<vmem>>, vector<16x32xf32>
    tpu.vector_store %arg7[%c0_14, %c0_15], %9 {strides = array<i32>} : memref<16x128xf32, #tpu.memory_space<vmem>>, vector<16x32xf32>,
    %c0_16 = arith.constant 0 : index
    %c32 = arith.constant 32 : index
    %11 = vector.load %arg7[%c0_16, %c32] : memref<16x128xf32, #tpu.memory_space<vmem>>, vector<16x32xf32>
    tpu.vector_store %arg7[%c0_16, %c32], %0 {strides = array<i32>} : memref<16x128xf32, #tpu.memory_space<vmem>>, vector<16x32xf32>,
    %c0_17 = arith.constant 0 : index
    %c0_18 = arith.constant 0 : index
    %12 = vector.load %arg7[%c0_17, %c0_18] : memref<16x128xf32, #tpu.memory_space<vmem>>, vector<16x64xf32>
    %c0_19 = arith.constant 0 : index
    %c0_20 = arith.constant 0 : index
    %c0_21 = arith.constant 0 : index
    %13 = vector.load %arg4[%c0_19, %c0_20, %c0_21] : memref<2x64x128xf32, #tpu.memory_space<vmem>>, vector<1x64x128xf32>
    %14 = vector.shape_cast %13 : vector<1x64x128xf32> to vector<64x128xf32>
    %cst_22 = arith.constant dense<0.000000e+00> : vector<16x128xf32>
    %15 = tpu.matmul %12, %14, %cst_22 {dimension_numbers = #tpu.dot_dimension_numbers<[1], [0], [0], [1], [0, 0, 1, 1], [], []>} : vector<16x64xf32>, vector<64x128xf32>, vector<16x128xf32> -> vector<16x128xf32>
    %16 = vector.broadcast %4 : vector<1x128xf32> to vector<16x128xf32>
    %17 = arith.addf %15, %16 : vector<16x128xf32>
    %18 = vector.extract_strided_slice %17 {offsets = [0, 0], sizes = [16, 32], strides = [1, 1]} : vector<16x128xf32> to vector<16x32xf32>
    %19 = arith.negf %18 : vector<16x32xf32>
    %20 = math.exp %19 : vector<16x32xf32>
    %cst_23 = arith.constant 1.000000e+00 : f32
    %21 = vector.broadcast %cst_23 : f32 to vector<16x32xf32>
    %22 = arith.addf %21, %20 : vector<16x32xf32>
    %23 = arith.divf %21, %22 : vector<16x32xf32>
    %24 = vector.extract_strided_slice %17 {offsets = [0, 32], sizes = [16, 32], strides = [1, 1]} : vector<16x128xf32> to vector<16x32xf32>
    %25 = arith.negf %24 : vector<16x32xf32>
    %26 = math.exp %25 : vector<16x32xf32>
    %cst_24 = arith.constant 1.000000e+00 : f32
    %27 = vector.broadcast %cst_24 : f32 to vector<16x32xf32>
    %28 = arith.addf %27, %26 : vector<16x32xf32>
    %29 = arith.divf %27, %28 : vector<16x32xf32>
    %30 = vector.extract_strided_slice %17 {offsets = [0, 64], sizes = [16, 32], strides = [1, 1]} : vector<16x128xf32> to vector<16x32xf32>
    %31 = vector.extract_strided_slice %17 {offsets = [0, 96], sizes = [16, 32], strides = [1, 1]} : vector<16x128xf32> to vector<16x32xf32>
    %32 = arith.mulf %23, %31 : vector<16x32xf32>
    %33 = arith.addf %30, %32 : vector<16x32xf32>
    %34 = math.tanh %33 : vector<16x32xf32>
    %cst_25 = arith.constant 1.000000e+00 : f32
    %35 = vector.broadcast %cst_25 : f32 to vector<16x32xf32>
    %36 = arith.subf %35, %29 : vector<16x32xf32>
    %37 = arith.mulf %36, %34 : vector<16x32xf32>
    %38 = arith.mulf %29, %0 : vector<16x32xf32>
    %39 = arith.addf %37, %38 : vector<16x32xf32>
    %cst_26 = arith.constant dense<0.000000e+00> : vector<16x32xf32>
    %40 = tpu.matmul %1, %39, %cst_26 {dimension_numbers = #tpu.dot_dimension_numbers<[1], [0], [0], [1], [0, 0, 1, 1], [], []>} : vector<16x16xf32>, vector<16x32xf32>, vector<16x32xf32> -> vector<16x32xf32>
    %c0_27 = arith.constant 0 : index
    %c0_28 = arith.constant 0 : index
    %41 = vector.load %arg7[%c0_27, %c0_28] : memref<16x128xf32, #tpu.memory_space<vmem>>, vector<16x32xf32>
    tpu.vector_store %arg7[%c0_27, %c0_28], %40 {strides = array<i32>} : memref<16x128xf32, #tpu.memory_space<vmem>>, vector<16x32xf32>,
    %c0_29 = arith.constant 0 : index
    %c32_30 = arith.constant 32 : index
    %42 = vector.load %arg7[%c0_29, %c32_30] : memref<16x128xf32, #tpu.memory_space<vmem>>, vector<16x32xf32>
    tpu.vector_store %arg7[%c0_29, %c32_30], %39 {strides = array<i32>} : memref<16x128xf32, #tpu.memory_space<vmem>>, vector<16x32xf32>,
    %c0_31 = arith.constant 0 : index
    %c0_32 = arith.constant 0 : index
    %43 = vector.load %arg7[%c0_31, %c0_32] : memref<16x128xf32, #tpu.memory_space<vmem>>, vector<16x64xf32>
    %c1_33 = arith.constant 1 : index
    %c0_34 = arith.constant 0 : index
    %c0_35 = arith.constant 0 : index
    %44 = vector.load %arg4[%c1_33, %c0_34, %c0_35] : memref<2x64x128xf32, #tpu.memory_space<vmem>>, vector<1x64x128xf32>
    %45 = vector.shape_cast %44 : vector<1x64x128xf32> to vector<64x128xf32>
    %cst_36 = arith.constant dense<0.000000e+00> : vector<16x128xf32>
    %46 = tpu.matmul %43, %45, %cst_36 {dimension_numbers = #tpu.dot_dimension_numbers<[1], [0], [0], [1], [0, 0, 1, 1], [], []>} : vector<16x64xf32>, vector<64x128xf32>, vector<16x128xf32> -> vector<16x128xf32>
    %47 = vector.broadcast %4 : vector<1x128xf32> to vector<16x128xf32>
    %48 = arith.addf %46, %47 : vector<16x128xf32>
    %49 = vector.extract_strided_slice %48 {offsets = [0, 0], sizes = [16, 32], strides = [1, 1]} : vector<16x128xf32> to vector<16x32xf32>
    %50 = arith.negf %49 : vector<16x32xf32>
    %51 = math.exp %50 : vector<16x32xf32>
    %cst_37 = arith.constant 1.000000e+00 : f32
    %52 = vector.broadcast %cst_37 : f32 to vector<16x32xf32>
    %53 = arith.addf %52, %51 : vector<16x32xf32>
    %54 = arith.divf %52, %53 : vector<16x32xf32>
    %55 = vector.extract_strided_slice %48 {offsets = [0, 32], sizes = [16, 32], strides = [1, 1]} : vector<16x128xf32> to vector<16x32xf32>
    %56 = arith.negf %55 : vector<16x32xf32>
    %57 = math.exp %56 : vector<16x32xf32>
    %cst_38 = arith.constant 1.000000e+00 : f32
    %58 = vector.broadcast %cst_38 : f32 to vector<16x32xf32>
    %59 = arith.addf %58, %57 : vector<16x32xf32>
    %60 = arith.divf %58, %59 : vector<16x32xf32>
    %61 = vector.extract_strided_slice %48 {offsets = [0, 64], sizes = [16, 32], strides = [1, 1]} : vector<16x128xf32> to vector<16x32xf32>
    %62 = vector.extract_strided_slice %48 {offsets = [0, 96], sizes = [16, 32], strides = [1, 1]} : vector<16x128xf32> to vector<16x32xf32>
    %63 = arith.mulf %54, %62 : vector<16x32xf32>
    %64 = arith.addf %61, %63 : vector<16x32xf32>
    %65 = math.tanh %64 : vector<16x32xf32>
    %cst_39 = arith.constant 1.000000e+00 : f32
    %66 = vector.broadcast %cst_39 : f32 to vector<16x32xf32>
    %67 = arith.subf %66, %60 : vector<16x32xf32>
    %68 = arith.mulf %67, %65 : vector<16x32xf32>
    %69 = arith.mulf %60, %39 : vector<16x32xf32>
    %70 = arith.addf %68, %69 : vector<16x32xf32>
    %c0_40 = arith.constant 0 : index
    %c0_41 = arith.constant 0 : index
    %71 = vector.load %arg7[%c0_40, %c0_41] : memref<16x128xf32, #tpu.memory_space<vmem>>, vector<16x32xf32>
    tpu.vector_store %arg7[%c0_40, %c0_41], %70 {strides = array<i32>} : memref<16x128xf32, #tpu.memory_space<vmem>>, vector<16x32xf32>,
    %c0_42 = arith.constant 0 : index
    %c32_43 = arith.constant 32 : index
    %72 = vector.load %arg7[%c0_42, %c32_43] : memref<16x128xf32, #tpu.memory_space<vmem>>, vector<16x32xf32>
    tpu.vector_store %arg7[%c0_42, %c32_43], %0 {strides = array<i32>} : memref<16x128xf32, #tpu.memory_space<vmem>>, vector<16x32xf32>,
    %c0_44 = arith.constant 0 : index
    %c0_45 = arith.constant 0 : index
    %73 = vector.load %arg7[%c0_44, %c0_45] : memref<16x128xf32, #tpu.memory_space<vmem>>, vector<16x128xf32>
    %74 = vector.broadcast %5 : vector<1x128xf32> to vector<16x128xf32>
    %75 = arith.mulf %73, %74 : vector<16x128xf32>
    %cst_46 = arith.constant dense<0.000000e+00> : vector<16xf32>
    %76 = vector.multi_reduction <add>, %75, %cst_46 [1] : vector<16x128xf32> to vector<16xf32>
    %77 = vector.shape_cast %76 : vector<16xf32> to vector<16x1xf32>
    %78 = vector.broadcast %6 : vector<1x1xf32> to vector<16x1xf32>
    %79 = arith.addf %77, %78 : vector<16x1xf32>
    %cst_47 = arith.constant 5.000000e-01 : f32
    %80 = vector.broadcast %cst_47 : f32 to vector<16x8xf32>
    %81 = arith.cmpf ogt, %2, %80 : vector<16x8xf32>
    %cst_48 = arith.constant -1.000000e+30 : f32
    %82 = vector.shape_cast %79 : vector<16x1xf32> to vector<16x1xf32>
    %83 = vector.broadcast %82 : vector<16x1xf32> to vector<16x8xf32>
    %84 = vector.broadcast %cst_48 : f32 to vector<16x8xf32>
    %85 = arith.select %81, %83, %84 : vector<16x8xi1>, vector<16x8xf32>
    %cst_49 = arith.constant dense<0xFF800000> : vector<8xf32>
    %86 = vector.multi_reduction <maximumf>, %85, %cst_49 [0] : vector<16x8xf32> to vector<8xf32>
    %87 = vector.shape_cast %86 : vector<8xf32> to vector<1x8xf32>
    %88 = vector.broadcast %87 : vector<1x8xf32> to vector<16x8xf32>
    %89 = arith.mulf %2, %88 : vector<16x8xf32>
    %cst_50 = arith.constant dense<0.000000e+00> : vector<16xf32>
    %90 = vector.multi_reduction <add>, %89, %cst_50 [1] : vector<16x8xf32> to vector<16xf32>
    %91 = vector.shape_cast %90 : vector<16xf32> to vector<16x1xf32>
    %92 = arith.subf %79, %91 : vector<16x1xf32>
    %93 = math.exp %92 : vector<16x1xf32>
    %94 = vector.broadcast %93 : vector<16x1xf32> to vector<16x8xf32>
    %95 = arith.mulf %2, %94 : vector<16x8xf32>
    %cst_51 = arith.constant dense<0.000000e+00> : vector<8xf32>
    %96 = vector.multi_reduction <add>, %95, %cst_51 [0] : vector<16x8xf32> to vector<8xf32>
    %97 = vector.shape_cast %96 : vector<8xf32> to vector<1x8xf32>
    %98 = vector.broadcast %97 : vector<1x8xf32> to vector<16x8xf32>
    %99 = arith.mulf %2, %98 : vector<16x8xf32>
    %cst_52 = arith.constant dense<0.000000e+00> : vector<16xf32>
    %100 = vector.multi_reduction <add>, %99, %cst_52 [1] : vector<16x8xf32> to vector<16xf32>
    %101 = vector.shape_cast %100 : vector<16xf32> to vector<16x1xf32>
    %cst_53 = arith.constant 1.000000e-30 : f32
    %102 = vector.broadcast %cst_53 : f32 to vector<16x1xf32>
    %103 = arith.maximumf %101, %102 : vector<16x1xf32>
    %104 = arith.divf %93, %103 : vector<16x1xf32>
    %105 = vector.broadcast %104 : vector<16x1xf32> to vector<16x128xf32>
    %106 = arith.mulf %105, %73 : vector<16x128xf32>
    %cst_54 = arith.constant dense<0.000000e+00> : vector<8x128xf32>
    %107 = tpu.matmul %3, %106, %cst_54 {dimension_numbers = #tpu.dot_dimension_numbers<[1], [0], [0], [1], [0, 0, 1, 1], [], []>} : vector<8x16xf32>, vector<16x128xf32>, vector<8x128xf32> -> vector<8x128xf32>
    %c0_55 = arith.constant 0 : index
    %c0_56 = arith.constant 0 : index
    %108 = vector.load %arg6[%c0_55, %c0_56] : memref<8x128xf32, #tpu.memory_space<vmem>>, vector<8x128xf32>
    tpu.vector_store %arg6[%c0_55, %c0_56], %107 {strides = array<i32>} : memref<8x128xf32, #tpu.memory_space<vmem>>, vector<8x128xf32>,
    return
  }
}

</mosaic_0001>

<bundles_post_ra>
// kernel: tpu_custom_call.1
= control target key start
LH: loop header
LB: loop body
LE: loop exit
PB: predicated region body
PF: predicated region fallthrough
CT: control target
= control target key end

     0   :  { %11 = vsyncpa [#allocation4], 0  ;;  %s867_s0 = inlined_call_operand.vmem [shape: f32[16,32], index: 0, kind: input, shape index: {}]   ;;  %s868_s1 = inlined_call_operand.hbm [shape: f32[16,16], index: 1, kind: input, shape index: {}]   ;;  %s869_s2 = inlined_call_operand.vmem [shape: f32[16,8], index: 2, kind: input, shape index: {}]   ;;  %s870_s3 = inlined_call_operand.vmem [shape: f32[8,16], index: 3, kind: input, shape index: {}]   ;;  %s871_s4 = inlined_call_operand.hbm [shape: f32[2,64,128], index: 4, kind: input, shape index: {}]   ;;  %s872_s5 = inlined_call_operand.vmem [shape: f32[3,128], index: 5, kind: input, shape index: {}]   ;;  %s873_s6 = inlined_call_operand.hbm [shape: f32[8,128], index: 6, kind: output, shape index: {}]  }
   0x1   :  { %12 = vsyncpa [#allocation7], 0 }
   0x2   :  { %13 = vsyncpa [#allocation5], 0  ;;  %s20_s23 = sshll.u32 %s868_s1, 4  ;;  %s701_s24 = smov [#allocation3]   ;;  %s21_s23 = int_to_ptr.hbm [resolvable:$true] %s20_s23 }
   0x3   :  { %s22_s25 = sshll.u32 %s701_s24, 4  ;;  %s37_s28 = sshll.u32 %s871_s4, 4  ;;  %s23_s25 = int_to_ptr.vmem [resolvable:$true] %s22_s25  ;;  %s38_s28 = int_to_ptr.hbm [resolvable:$true] %s37_s28 }
   0x4   :  { %s702_s29 = smov 128   ;;  %s703_s30 = smov 8  }
   0x5   :  { %28 = dma.hbm_to_vmem [thread:$0]  %s21_s23, 256, %s23_s25, [#allocation4], %s702_s29, %s702_s29, %s703_s30  }
   0x6   :  { %s704_s7 = smov [#allocation6]  }
   0x7   :  { %s39_s8 = sshll.u32 %s704_s7, 4  ;;  %s40_s8 = int_to_ptr.vmem [resolvable:$true] %s39_s8 }
   0x8   :  { %45 = dma.hbm_to_vmem [thread:$0]  %s38_s28, 2048, %s40_s8, [#allocation7], %s702_s29, %s702_s29, %s703_s30  }
   0x9   :  { %695 = dma.done.wait [#allocation4], 256  }
   0xa   :  { %696 = vsyncadd [#allocation4], 4294967040 }
   0xb   :  { %697 = dma.done.wait [#allocation7], 2048  }
   0xc   :  { %698 = vsyncadd [#allocation7], 4294965248  ;;  %v705_v0 = vmov 0.0   ;;  %v57_v1 = vld [vmem:[%s867_s0 + $0x8] sm:$0xff]  ;;  %v56_v2 = vld [vmem:[%s867_s0] sm:$0xff]  ;;  %vm68_vm0 = vcmask 130048  }
   0xd   :  { %66 = vst [vmem:[#allocation2] sm:$0xff] %v705_v0  ;;  %89 = vmatpush.msra.mxu0 %v57_v1  ;;  %v758_v3 = vld [vmem:[#allocation3] sm:$0xff]  ;;  %s706_s11 = smov 32   ;;  %v121_v4 = vld [vmem:[#allocation6 + $0x38] sm:$0xff]  ;;  %v119_v6 = vld [vmem:[#allocation6 + $0x28] sm:$0xff]  ;;  %vm98_vm1 = vcmask 261120  }
   0xe   :  { %67 = vst [vmem:[#allocation2 + $0x8] sm:$0xff] %v705_v0  ;;  %103 = vrot.lane.b32.xlu0 %v56_v2, %s706_s11  ;;  %v120_v5 = vld [vmem:[#allocation6 + $0x30] sm:$0xff]  ;;  %138 = vmatpush.msra.mxu1 %v121_v4  ;;  %v763_v7 = vld [vmem:[#allocation3 + $0x8] sm:$0xff]  ;;  %v118_v8 = vld [vmem:[#allocation6 + $0x20] sm:$0xff]  ;;  %vm109_vm2 = vcmask 523520   ;;  %vm123_vm3 = vcmask 523264  }
   0xf   :  { %90 = vmatpush.msra.mxu0 %v56_v2  ;;  %v117_v9 = vld [vmem:[#allocation6 + $0x18] sm:$0xff]  ;;  %v116_v10 = vld [vmem:[#allocation6 + $0x10] sm:$0xff]  ;;  %v115_v11 = vld [vmem:[#allocation6 + $0x8] sm:$0xff]  ;;  %s707_s13 = smov 64   ;;  %s708_s14 = smov 96  }
  0x10   :  { %557 = vmatmul.msk.f32.vlgmr.msra.gmra.mxu0 %vm68_vm0, %v758_v3  ;;  %139 = vmatpush.msra.mxu1 %v120_v5  ;;  %v114_v12 = vld [vmem:[#allocation6] sm:$0xff]  ;;  %s710_s23 = smov [#allocation8]   ;;  %s546_s27 = sshll.u32 %s873_s6, 4  ;;  %s547_s27 = int_to_ptr.hbm [resolvable:$true] %s546_s27 }
  0x11   :  { %v783_v20 = vld [vmem:[%s872_s5] ss:$0 sm:$0xff]  ;;  %s544_s24 = sshll.u32 %s710_s23, 4  ;;  %s545_s24 = int_to_ptr.vmem [resolvable:$true] %s544_s24 }
  0x12   :  { %140 = vmatpush.msra.mxu1 %v119_v6 }
  0x14   :  { %141 = vmatpush.msra.mxu1 %v118_v8 }
  0x16   :  { %105 = vrot.lane.b32.xlu0 %v57_v1, %s706_s11  ;;  %142 = vmatpush.msra.mxu1 %v117_v9  ;;  %v274_v9 = vld [vmem:[#allocation6 + $0x78] sm:$0xff] }
  0x17   :  { %289 = vmatpush.msra.mxu3 %v274_v9 }
  0x18   :  { %558 = vmatmul.msk.f32.gmra.mxu0 %vm68_vm0, %v763_v7  ;;  %143 = vmatpush.msra.mxu1 %v116_v10  ;;  %v273_v10 = vld [vmem:[#allocation6 + $0x70] sm:$0xff] }
  0x19   :  { %290 = vmatpush.msra.mxu3 %v273_v10 }
  0x1a   :  { %144 = vmatpush.msra.mxu1 %v115_v11  ;;  %v272_v11 = vld [vmem:[#allocation6 + $0x68] sm:$0xff] }
  0x1b   :  { %291 = vmatpush.msra.mxu3 %v272_v11 }
  0x1c   :  { %145 = vmatpush.msra.mxu1 %v114_v12 }
  0x80   :  { %v768_v13 = vpop.permute.xlu0 %103 }
  0x88   :  { %v773_v15 = vpop.permute.xlu0 %105 }
  0x8d   :  { %v92_v14 = vpop.f32.mrf.mxu0 }
  0x8e   :  { %99 = vst.msk [vmem:[#allocation2] sm:$0xff] %vm98_vm1, %v92_v14 }
  0x8f   :  { %110 = vst.msk [vmem:[#allocation2] sm:$0xff] %vm109_vm2, %v768_v13 }
  0x95   :  { %v95_v16 = vpop.f32.mrf.mxu0 }
  0x96   :  { %100 = vst.msk [vmem:[#allocation2 + $0x8] sm:$0xff] %vm98_vm1, %v95_v16  ;;  %v112_v17 = vld [vmem:[#allocation2] sm:$0xff] }
  0x97   :  { %111 = vst.msk [vmem:[#allocation2 + $0x8] sm:$0xff] %vm109_vm2, %v773_v15  ;;  %559 = vmatmul.msk.f32.vlgmr.msra.gmra.mxu1 %vm123_vm3, %v112_v17  ;;  %v271_v17 = vld [vmem:[#allocation6 + $0x60] sm:$0xff] }
  0x98   :  { %292 = vmatpush.msra.mxu3 %v271_v17 }
  0x9e   :  { %v113_v18 = vld [vmem:[#allocation2 + $0x8] sm:$0xff] }
  0x9f   :  { %560 = vmatmul.msk.f32.gmra.mxu1 %vm123_vm3, %v113_v18  ;;  %v270_v18 = vld [vmem:[#allocation6 + $0x58] sm:$0xff] }
  0xa0   :  { %293 = vmatpush.msra.mxu3 %v270_v18 }
 0x114   :  { %v147_v19 = vpop.f32.mrf.mxu1 }
 0x115   :  { %v148_v23 = vadd.f32 %v783_v20, %v147_v19  ;;  %v269_v19 = vld [vmem:[#allocation6 + $0x50] sm:$0xff] }
 0x116   :  { %294 = vmatpush.msra.mxu3 %v269_v19 }
 0x117   :  { %v561_v25 = vmul.f32 -1.442695, %v148_v23 }
 0x11c   :  { %v150_v21 = vpop.f32.mrf.mxu1 }
 0x11d   :  { %v151_v22 = vadd.f32 %v783_v20, %v150_v21  ;;  %v268_v21 = vld [vmem:[#allocation6 + $0x48] sm:$0xff] }
 0x11e   :  { %295 = vmatpush.msra.mxu3 %v268_v21 }
 0x11f   :  { %195 = vrot.lane.b32.xlu1 %v151_v22, %s706_s11  ;;  %v562_v24 = vmul.f32 -1.442695, %v151_v22 }
 0x121   :  { %591 = vpow2.f32 %v562_v24 }
 0x122   :  { %593 = vpow2.f32 %v561_v25 }
 0x127   :  { %193 = vrot.lane.b32.xlu1 %v148_v23, %s706_s11  ;;  %v592_v26 = vpop.eup %591 }
 0x128   :  { %v160_v27 = vadd.f32 1.0, %v592_v26  ;;  %v594_v28 = vpop.eup %593 }
 0x129   :  { %v159_v29 = vadd.f32 1.0, %v594_v28 }
 0x12a   :  { %595 = vrcp.f32 %v160_v27  ;;  %v187_v38 = vand.u32 2147483648, %v160_v27  ;;  %vm181_vm5 = vweird.f32 %v160_v27  ;;  %v185_v39 = vand.u32 2147483647, %v160_v27 }
 0x12b   :  { %597 = vrcp.f32 %v159_v29  ;;  %v172_v47 = vand.u32 2147483648, %v159_v29  ;;  %vm166_vm9 = vweird.f32 %v159_v29  ;;  %v170_v48 = vand.u32 2147483647, %v159_v29 }
 0x12c   :  { %v188_v42 = vor.u32 1.1754944e-38, %v187_v38  ;;  %vm186_vm7 = vcmp.eq.f32.partialorder %v185_v39, 8.507059e+37 }
 0x12d   :  { %v173_v50 = vor.u32 1.1754944e-38, %v172_v47  ;;  %vm171_vm11 = vcmp.eq.f32.partialorder %v170_v48, 8.507059e+37 }
 0x130   :  { %v596_v30 = vpop.eup %595 }
 0x131   :  { %v177_v31 = vmul.f32 %v596_v30, %v160_v27  ;;  %v598_v33 = vpop.eup %597  ;;  %vm182_vm4 = vweird.f32 %v596_v30 }
 0x132   :  { %v162_v35 = vmul.f32 %v598_v33, %v159_v29  ;;  %vm183_vm6 = vmor %vm181_vm5, %vm182_vm4  ;;  %vm167_vm8 = vweird.f32 %v598_v33 }
 0x133   :  { %v178_v32 = vsub.f32 1.0, %v177_v31  ;;  %vm168_vm10 = vmor %vm166_vm9, %vm167_vm8 }
 0x134   :  { %v163_v37 = vsub.f32 1.0, %v162_v35 }
 0x135   :  { %v179_v34 = vmul.f32 %v596_v30, %v178_v32 }
 0x136   :  { %v164_v41 = vmul.f32 %v598_v33, %v163_v37 }
 0x137   :  { %v180_v36 = vadd.f32 %v596_v30, %v179_v34 }
 0x138   :  { %v165_v46 = vadd.f32 %v598_v33, %v164_v41 }
 0x139   :  { %v184_v40 = vsel %vm183_vm6, %v596_v30, %v180_v36 }
 0x13a   :  { %v189_v44 = vsel %vm186_vm7, %v188_v42, %v184_v40  ;;  %v169_v49 = vsel %vm168_vm10, %v598_v33, %v165_v46  ;;  %vm418_vm7 = vcmask 64512  }
 0x13b   :  { %v174_v51 = vsel %vm171_vm11, %v173_v50, %v169_v49  ;;  %v214_v61 = vsub.f32 1.0, %v189_v44  ;;  %v226_v1 = vmul.f32 %v189_v44, %v773_v15 }
 0x13c   :  { %v213_v63 = vsub.f32 1.0, %v174_v51  ;;  %v225_v2 = vmul.f32 %v174_v51, %v768_v13 }
 0x191   :  { %v196_v43 = vpop.permute.xlu1 %195 }
 0x192   :  { %v200_v45 = vmul.f32 %v196_v43, %v189_v44 }
 0x194   :  { %205 = vrot.lane.b32.xlu2 %v200_v45, %s707_s13 }
 0x199   :  { %v194_v52 = vpop.permute.xlu1 %193 }
 0x19a   :  { %v199_v53 = vmul.f32 %v194_v52, %v174_v51 }
 0x19c   :  { %203 = vrot.lane.b32.xlu2 %v199_v53, %s707_s13 }
 0x1ee   :  { %v206_v54 = vpop.permute.xlu2 %205 }
 0x1ef   :  { %v210_v55 = vadd.f32 %v206_v54, %v151_v22  ;;  %v267_v22 = vld [vmem:[#allocation6 + $0x40] sm:$0xff] }
 0x1f0   :  { %296 = vmatpush.msra.mxu3 %v267_v22  ;;  %v590_v22 = vld [vmem:[%s872_s5 + $0x2] ss:$0 sm:$0xff] }
 0x1f1   :  { %599 = vtanh.f32 %v210_v55 }
 0x1f6   :  { %v204_v56 = vpop.permute.xlu2 %203 }
 0x1f7   :  { %v600_v57 = vpop.eup %599  ;;  %v209_v58 = vadd.f32 %v204_v56, %v148_v23 }
 0x1f8   :  { %219 = vrot.lane.b32.xlu0 %v600_v57, %s708_s14 }
 0x1f9   :  { %601 = vtanh.f32 %v209_v58 }
 0x1ff   :  { %v602_v59 = vpop.eup %601 }
 0x200   :  { %217 = vrot.lane.b32.xlu1 %v602_v59, %s708_s14 }
 0x26a   :  { %v220_v60 = vpop.permute.xlu0 %219 }
 0x26b   :  { %v224_v62 = vmul.f32 %v220_v60, %v214_v61 }
 0x26d   :  { %v795_v5 = vadd.f32 %v226_v1, %v224_v62 }
 0x272   :  { %v218_v0 = vpop.permute.xlu1 %217 }
 0x273   :  { %v223_v4 = vmul.f32 %v218_v0, %v213_v63 }
 0x275   :  { %v797_v6 = vadd.f32 %v225_v2, %v223_v4 }
 0x277   :  { %v580_v8 = vpack.i.bf16 %v797_v6, %v795_v5 }
 0x279   :  { %581 = vrot.lane.b32.xlu2 %v580_v8, %s708_s14 }
 0x2d3   :  { %v582_v12 = vpop.permute.xlu2 %581 }
 0x2d4   :  { %v583_v14 = vunpack.i.l.bf16 %v582_v12  ;;  %v584_v16 = vunpack.i.h.bf16 %v582_v12 }
 0x2d6   :  { %251 = vmatpush.msra.mxu2 %v583_v14 }
 0x2d8   :  { %252 = vmatpush.msra.mxu2 %v584_v16 }
 0x2d9   :  { %563 = vmatmul.msk.f32.vlgmr.msra.gmra.mxu2 %vm68_vm0, %v758_v3 }
 0x2e1   :  { %564 = vmatmul.msk.f32.gmra.mxu2 %vm68_vm0, %v763_v7 }
 0x35c   :  { %v254_v23 = vpop.f32.mrf.mxu2 }
 0x35d   :  { %260 = vst.msk [vmem:[#allocation2] sm:$0xff] %vm98_vm1, %v254_v23 }
 0x35e   :  { %262 = vst.msk [vmem:[#allocation2] sm:$0xff] %vm109_vm2, %v797_v6 }
 0x364   :  { %v257_v3 = vpop.f32.mrf.mxu2 }
 0x365   :  { %261 = vst.msk [vmem:[#allocation2 + $0x8] sm:$0xff] %vm98_vm1, %v257_v3  ;;  %v264_v7 = vld [vmem:[#allocation2] sm:$0xff] }
 0x366   :  { %263 = vst.msk [vmem:[#allocation2 + $0x8] sm:$0xff] %vm109_vm2, %v795_v5  ;;  %565 = vmatmul.msk.f32.vlgmr.msra.gmra.mxu3 %vm123_vm3, %v264_v7 }
 0x36d   :  { %v265_v24 = vld [vmem:[#allocation2 + $0x8] sm:$0xff] }
 0x36e   :  { %566 = vmatmul.msk.f32.gmra.mxu3 %vm123_vm3, %v265_v24 }
 0x3e9   :  { %v298_v25 = vpop.f32.mrf.mxu3 }
 0x3ea   :  { %v299_v26 = vadd.f32 %v783_v20, %v298_v25  ;;  %v60_v25 = vld [vmem:[%s869_s2] sm:$0xff] }
 0x3ec   :  { %344 = vrot.lane.b32.xlu0 %v299_v26, %s706_s11  ;;  %v567_v29 = vmul.f32 -1.442695, %v299_v26 }
 0x3ee   :  { %603 = vpow2.f32 %v567_v29 }
 0x3f1   :  { %v301_v27 = vpop.f32.mrf.mxu3 }
 0x3f2   :  { %v302_v28 = vadd.f32 %v783_v20, %v301_v27 }
 0x3f4   :  { %346 = vrot.lane.b32.xlu1 %v302_v28, %s706_s11  ;;  %v568_v30 = vmul.f32 -1.442695, %v302_v28  ;;  %v604_v31 = vpop.eup %603 }
 0x3f5   :  { %v310_v32 = vadd.f32 1.0, %v604_v31 }
 0x3f6   :  { %605 = vpow2.f32 %v568_v30 }
 0x3f7   :  { %607 = vrcp.f32 %v310_v32  ;;  %v323_v42 = vand.u32 2147483648, %v310_v32  ;;  %vm317_vm13 = vweird.f32 %v310_v32  ;;  %v321_v43 = vand.u32 2147483647, %v310_v32 }
 0x3f9   :  { %v324_v46 = vor.u32 1.1754944e-38, %v323_v42  ;;  %vm322_vm15 = vcmp.eq.f32.partialorder %v321_v43, 8.507059e+37 }
 0x3fc   :  { %v606_v33 = vpop.eup %605 }
 0x3fd   :  { %v311_v34 = vadd.f32 1.0, %v606_v33  ;;  %v608_v35 = vpop.eup %607 }
 0x3fe   :  { %v313_v36 = vmul.f32 %v608_v35, %v310_v32  ;;  %vm318_vm12 = vweird.f32 %v608_v35 }
 0x3ff   :  { %609 = vrcp.f32 %v311_v34  ;;  %vm319_vm14 = vmor %vm317_vm13, %vm318_vm12  ;;  %v338_v51 = vand.u32 2147483648, %v311_v34  ;;  %vm332_vm4 = vweird.f32 %v311_v34  ;;  %v336_v52 = vand.u32 2147483647, %v311_v34 }
 0x400   :  { %v314_v37 = vsub.f32 1.0, %v313_v36 }
 0x401   :  { %v339_v54 = vor.u32 1.1754944e-38, %v338_v51  ;;  %vm337_vm6 = vcmp.eq.f32.partialorder %v336_v52, 8.507059e+37 }
 0x402   :  { %v315_v39 = vmul.f32 %v608_v35, %v314_v37 }
 0x404   :  { %v316_v41 = vadd.f32 %v608_v35, %v315_v39 }
 0x405   :  { %v610_v38 = vpop.eup %609 }
 0x406   :  { %v328_v40 = vmul.f32 %v610_v38, %v311_v34  ;;  %v320_v44 = vsel %vm319_vm14, %v608_v35, %v316_v41  ;;  %vm333_vm3 = vweird.f32 %v610_v38 }
 0x407   :  { %v325_v48 = vsel %vm322_vm15, %v324_v46, %v320_v44  ;;  %vm334_vm5 = vmor %vm332_vm4, %vm333_vm3 }
 0x408   :  { %v329_v20 = vsub.f32 1.0, %v328_v40  ;;  %v364_v0 = vsub.f32 1.0, %v325_v48  ;;  %v376_v2 = vmul.f32 %v325_v48, %v797_v6  ;;  %v589_v6 = vld [vmem:[%s872_s5 + $0x1] ss:$0 sm:$0xff] }
 0x40a   :  { %v330_v45 = vmul.f32 %v610_v38, %v329_v20 }
 0x40c   :  { %v331_v50 = vadd.f32 %v610_v38, %v330_v45 }
 0x40e   :  { %v335_v53 = vsel %vm334_vm5, %v610_v38, %v331_v50 }
 0x40f   :  { %v340_v56 = vsel %vm337_vm6, %v339_v54, %v335_v53 }
 0x410   :  { %v365_v9 = vsub.f32 1.0, %v340_v56  ;;  %v377_v11 = vmul.f32 %v340_v56, %v795_v5 }
 0x45e   :  { %v345_v47 = vpop.permute.xlu0 %344 }
 0x45f   :  { %v350_v49 = vmul.f32 %v345_v47, %v325_v48 }
 0x461   :  { %354 = vrot.lane.b32.xlu2 %v350_v49, %s707_s13 }
 0x466   :  { %v347_v55 = vpop.permute.xlu1 %346 }
 0x467   :  { %v351_v57 = vmul.f32 %v347_v55, %v340_v56 }
 0x469   :  { %356 = vrot.lane.b32.xlu0 %v351_v57, %s707_s13 }
 0x4bb   :  { %v355_v58 = vpop.permute.xlu2 %354 }
 0x4bc   :  { %v360_v59 = vadd.f32 %v355_v58, %v299_v26  ;;  %v61_v26 = vld [vmem:[%s869_s2 + $0x8] sm:$0xff] }
 0x4be   :  { %611 = vtanh.f32 %v360_v59 }
 0x4c4   :  { %v612_v60 = vpop.eup %611 }
 0x4c5   :  { %368 = vrot.lane.b32.xlu1 %v612_v60, %s708_s14 }
 0x4db   :  { %v357_v61 = vpop.permute.xlu0 %356 }
 0x4dc   :  { %v361_v62 = vadd.f32 %v357_v61, %v302_v28 }
 0x4de   :  { %613 = vtanh.f32 %v361_v62 }
 0x4e4   :  { %v614_v63 = vpop.eup %613 }
 0x4e5   :  { %370 = vrot.lane.b32.xlu2 %v614_v63, %s708_s14 }
 0x537   :  { %v369_v1 = vpop.permute.xlu1 %368 }
 0x538   :  { %v374_v4 = vmul.f32 %v369_v1, %v364_v0 }
 0x53a   :  { %v378_v8 = vadd.f32 %v376_v2, %v374_v4 }
 0x53c   :  { %382 = vrot.lane.b32.xlu0 %v378_v8, %s708_s14 }
 0x53f   :  { %v371_v10 = vpop.permute.xlu2 %370 }
 0x540   :  { %v375_v12 = vmul.f32 %v371_v10, %v365_v9 }
 0x542   :  { %v379_v14 = vadd.f32 %v377_v11, %v375_v12 }
 0x544   :  { %384 = vrot.lane.b32.xlu1 %v379_v14, %s708_s14 }
 0x5ae   :  { %v383_v16 = vpop.permute.xlu0 %382 }
 0x5af   :  { %388 = vst.msk [vmem:[#allocation2] sm:$0xff] %vm98_vm1, %v383_v16 }
 0x5b0   :  { %390 = vst.msk [vmem:[#allocation2] sm:$0xff] %vm109_vm2, %v768_v13  ;;  %v709_v13 = vmov 0  }
 0x5b1   :  { %585 = vset.pattern.permute.xlu1 %v709_v13  ;;  %587 = vset.pattern.permute.xlu0 %v709_v13 }
 0x5b2   :  { %586 = vset.pattern.permute.xlu2 %v709_v13 }
 0x5b6   :  { %v385_v17 = vpop.permute.xlu1 %384 }
 0x5b7   :  { %389 = vst.msk [vmem:[#allocation2 + $0x8] sm:$0xff] %vm98_vm1, %v385_v17  ;;  %v833_v18 = vld [vmem:[#allocation2] sm:$0xff]  ;;  %vm404_vm1 = vcmp.gt.f32.partialorder %v60_v25, 0.5 }
 0x5b8   :  { %391 = vst.msk [vmem:[#allocation2 + $0x8] sm:$0xff] %vm109_vm2, %v773_v15  ;;  %v395_v5 = vmul.f32 %v589_v6, %v833_v18  ;;  %vm405_vm2 = vcmp.gt.f32.partialorder %v61_v26, 0.5 }
 0x5ba   :  { %397 = vadd.xlane.f32.xlu2 %v395_v5 }
 0x5bf   :  { %v838_v19 = vld [vmem:[#allocation2 + $0x8] sm:$0xff] }
 0x5c0   :  { %v396_v21 = vmul.f32 %v589_v6, %v838_v19 }
 0x5c2   :  { %399 = vadd.xlane.f32.xlu0 %v396_v21 }
 0x62d   :  { %v398_v23 = vpop.xlane.xlu2 %397 }
 0x62e   :  { %v402_v3 = vadd.f32 %v590_v22, %v398_v23 }
 0x630   :  { %408 = vperm.xlu1 %585, %v402_v3  }
 0x635   :  { %v400_v15 = vpop.xlane.xlu0 %399 }
 0x636   :  { %v403_v7 = vadd.f32 %v590_v22, %v400_v15 }
 0x638   :  { %413 = vperm.xlu1 %585, %v403_v7  }
 0x6a2   :  { %v409_v24 = vpop.permute.xlu1 %408 }
 0x6a3   :  { %v416_v27 = vsel %vm404_vm1, %v409_v24, -1e+30 }
 0x6a4   :  { %v419_v30 = vsel %vm418_vm7, %v416_v27, -inf }
 0x6aa   :  { %v414_v28 = vpop.permute.xlu1 %413 }
 0x6ab   :  { %v417_v29 = vsel %vm405_vm2, %v414_v28, -1e+30 }
 0x6ac   :  { %v420_v31 = vsel %vm418_vm7, %v417_v29, -inf }
 0x6ad   :  { %v421_v32 = vmax.f32 %v419_v30, %v420_v31 }
 0x6af   :  { %v422_v33 = vrot.slane %v421_v32, 4 }
 0x6b1   :  { %v423_v34 = vmax.f32 %v421_v32, %v422_v33 }
 0x6b3   :  { %v424_v35 = vrot.slane %v423_v34, 2 }
 0x6b5   :  { %v425_v36 = vmax.f32 %v423_v34, %v424_v35 }
 0x6b7   :  { %v426_v37 = vrot.slane %v425_v36, 1 }
 0x6b9   :  { %v427_v38 = vmax.f32 %v425_v36, %v426_v37  ;;  %v62_v36 = vld [vmem:[%s870_s3] sm:$0xff] }
 0x6bb   :  { %v429_v39 = vmul.f32 %v427_v38, %v61_v26  ;;  %v428_v40 = vmul.f32 %v427_v38, %v60_v25 }
 0x6bd   :  { %v433_v41 = vsel %vm418_vm7, %v429_v39, 0.0  ;;  %v430_v20 = vsel %vm418_vm7, %v428_v40, 0.0 }
 0x6be   :  { %434 = vadd.xlane.f32.xlu2 %v433_v41  ;;  %431 = vadd.xlane.f32.xlu1 %v430_v20 }
 0x731   :  { %v435_v42 = vpop.xlane.xlu2 %434  ;;  %v432_v43 = vpop.xlane.xlu1 %431 }
 0x732   :  { %v437_v44 = vsub.f32 %v403_v7, %v435_v42  ;;  %v436_v45 = vsub.f32 %v402_v3, %v432_v43 }
 0x734   :  { %v440_v46 = vmul.f32 1.442695, %v437_v44  ;;  %v438_v47 = vmul.f32 1.442695, %v436_v45 }
 0x736   :  { %615 = vpow2.f32 %v440_v46 }
 0x737   :  { %617 = vpow2.f32 %v438_v47 }
 0x73c   :  { %v616_v48 = vpop.eup %615 }
 0x73d   :  { %v618_v49 = vpop.eup %617  ;;  %449 = vperm.xlu0 %587, %v616_v48  }
 0x73e   :  { %444 = vperm.xlu2 %586, %v618_v49  }
 0x798   :  { %v445_v50 = vpop.permute.xlu2 %444 }
 0x799   :  { %v452_v51 = vmul.f32 %v445_v50, %v60_v25 }
 0x79b   :  { %v454_v54 = vsel %vm418_vm7, %v452_v51, 0.0 }
 0x7af   :  { %v450_v52 = vpop.permute.xlu0 %449 }
 0x7b0   :  { %v453_v53 = vmul.f32 %v450_v52, %v61_v26 }
 0x7b2   :  { %v455_v55 = vsel %vm418_vm7, %v453_v53, 0.0 }
 0x7b3   :  { %v456_v56 = vadd.f32 %v455_v55, %v454_v54 }
 0x7b5   :  { %v457_v57 = vrot.slane %v456_v56, 4 }
 0x7b7   :  { %v458_v58 = vadd.f32 %v457_v57, %v456_v56 }
 0x7b9   :  { %v459_v59 = vrot.slane %v458_v58, 2 }
 0x7bb   :  { %v460_v60 = vadd.f32 %v459_v59, %v458_v58 }
 0x7bd   :  { %v461_v61 = vrot.slane %v460_v60, 1 }
 0x7bf   :  { %v462_v62 = vadd.f32 %v461_v61, %v460_v60 }
 0x7c1   :  { %v464_v63 = vmul.f32 %v462_v62, %v61_v26  ;;  %v463_v0 = vmul.f32 %v462_v62, %v60_v25 }
 0x7c3   :  { %v468_v1 = vsel %vm418_vm7, %v464_v63, 0.0  ;;  %v465_v2 = vsel %vm418_vm7, %v463_v0, 0.0 }
 0x7c4   :  { %469 = vadd.xlane.f32.xlu1 %v468_v1  ;;  %466 = vadd.xlane.f32.xlu2 %v465_v2 }
 0x837   :  { %v470_v4 = vpop.xlane.xlu1 %469  ;;  %v467_v8 = vpop.xlane.xlu2 %466 }
 0x838   :  { %v472_v9 = vmax.f32 %v470_v4, 1e-30  ;;  %v471_v10 = vmax.f32 %v467_v8, 1e-30 }
 0x83a   :  { %619 = vrcp.f32 %v472_v9  ;;  %v499_v5 = vand.u32 2147483648, %v472_v9  ;;  %v497_v13 = vand.u32 2147483647, %v472_v9  ;;  %v484_v22 = vand.u32 2147483648, %v471_v10 }
 0x83b   :  { %621 = vrcp.f32 %v471_v10  ;;  %v482_v3 = vand.u32 2147483647, %v471_v10  ;;  %vm493_vm10 = vweird.f32 %v472_v9  ;;  %vm478_vm12 = vweird.f32 %v471_v10 }
 0x83c   :  { %v500_v7 = vor.u32 1.1754944e-38, %v499_v5  ;;  %vm498_vm13 = vcmp.eq.f32.partialorder %v497_v13, 8.507059e+37  ;;  %v485_v26 = vor.u32 1.1754944e-38, %v484_v22 }
 0x83d   :  { %vm483_vm15 = vcmp.eq.f32.partialorder %v482_v3, 8.507059e+37 }
 0x840   :  { %v620_v11 = vpop.eup %619 }
 0x841   :  { %v622_v12 = vpop.eup %621  ;;  %v489_v14 = vmul.f32 %v620_v11, %v472_v9  ;;  %vm494_vm8 = vweird.f32 %v620_v11 }
 0x842   :  { %v474_v16 = vmul.f32 %v622_v12, %v471_v10  ;;  %vm479_vm9 = vweird.f32 %v622_v12  ;;  %vm495_vm11 = vmor %vm493_vm10, %vm494_vm8 }
 0x843   :  { %v490_v6 = vsub.f32 1.0, %v489_v14  ;;  %vm480_vm14 = vmor %vm478_vm12, %vm479_vm9 }
 0x844   :  { %v475_v17 = vsub.f32 1.0, %v474_v16 }
 0x845   :  { %v491_v21 = vmul.f32 %v620_v11, %v490_v6 }
 0x846   :  { %v476_v23 = vmul.f32 %v622_v12, %v475_v17 }
 0x847   :  { %v492_v15 = vadd.f32 %v620_v11, %v491_v21 }
 0x848   :  { %v477_v24 = vadd.f32 %v622_v12, %v476_v23 }
 0x849   :  { %v496_v25 = vsel %vm495_vm11, %v620_v11, %v492_v15 }
 0x84a   :  { %v501_v27 = vsel %vm498_vm13, %v500_v7, %v496_v25  ;;  %v481_v28 = vsel %vm480_vm14, %v622_v12, %v477_v24 }
 0x84b   :  { %v502_v29 = vmul.f32 %v616_v48, %v501_v27  ;;  %v486_v30 = vsel %vm483_vm15, %v485_v26, %v481_v28 }
 0x84c   :  { %v487_v31 = vmul.f32 %v618_v49, %v486_v30 }
 0x84d   :  { %510 = vperm.xlu1 %585, %v502_v29  }
 0x84e   :  { %505 = vperm.xlu0 %587, %v487_v31  }
 0x8bf   :  { %v511_v32 = vpop.permute.xlu1 %510 }
 0x8c0   :  { %v514_v33 = vmul.f32 %v511_v32, %v838_v19  ;;  %v506_v34 = vpop.permute.xlu0 %505 }
 0x8c1   :  { %v513_v35 = vmul.f32 %v506_v34, %v833_v18 }
 0x8c2   :  { %532 = vmatpush.msrb.mxu0 %v514_v33 }
 0x8c4   :  { %533 = vmatpush.msrb.mxu0 %v513_v35 }
 0x8c5   :  { %569 = vmatmul.msk.f32.vlgmr.msrb.gmra.mxu0 %vm68_vm0, %v62_v36 }
 0x942   :  { %v535_v19 = vpop.f32.mrf.mxu0 }
 0x943   :  { %538 = vst [vmem:[#allocation8] sm:$0xff] %v535_v19 }
 0x944   :  { %549 = dma.vmem_to_hbm [thread:$0]  %s545_s24, 128, %s547_s27, [#allocation5]  }
 0x945   :  { %699 = dma.done.wait [#allocation5], 128  }
 0x946   :  { %700 = vsyncadd [#allocation5], 4294967168 }
 0x947   :  { %554 = vsyncpa [#allocation4], 1 }
 0x948   :  { %555 = vsyncpa [#allocation7], 1 }
 0x949   :  { %556 = vsyncpa [#allocation5], 1 }

</bundles_post_ra>
